<compile_context>
chip_gen: v5e
topology: v5e:2x2
jax: 0.10.0
libtpu: 0.0.40
codegen_flags: <defaults>
</compile_context>

<pallas_src>
import jax
import jax.numpy as jnp
from jax.experimental import pallas as pl
from jax.experimental.pallas import tpu as pltpu

KERNEL_SIZE = 3  # fixed by the module (padding=1 <=> "same" for k=3)


def _shift_rows(x, direction):
    """Shift the rows of a (M, C) array by one, filling with a zero row.

    direction=+1: row i receives x[i-1] (row 0 becomes zero)
    direction=-1: row i receives x[i+1] (last row becomes zero)
    """
    zero = jnp.zeros((1, x.shape[1]), x.dtype)
    if direction > 0:
        return jnp.concatenate([zero, x[:-1, :]], axis=0)
    return jnp.concatenate([x[1:, :], zero], axis=0)


def _cnn_reg_kernel(x_ref, w1_ref, b1_ref, w2_ref, b2_ref, wf_ref, bf_ref,
                    out_ref):
    # x_ref:   (TB, L, Cin) f32   input tile (TB batch elements, unpadded)
    # w1_ref:  (3*Cin, C1)  bf16  conv1 weight, im2col rows (k-major, then cin)
    # b1_ref:  (1, C1)      f32
    # w2_ref:  (3, C1, C2)  bf16  conv2 weight, kernel-major
    # b2_ref:  (1, C2)      f32
    # wf_ref:  (C2, Dout)   f32   fc weight (transposed vs. torch Linear)
    # bf_ref:  (1, Dout)    f32
    # out_ref: (TB, Dout)   f32
    tb, seq, cin = x_ref.shape
    c2 = b2_ref.shape[1]
    m = tb * seq

    # Row r = b*L + i, channels on lanes, (batch, length) flattened on sublanes.
    x = x_ref[...].reshape(m, cin)

    # Per-row sequence position: masks the padding=1 boundary of every batch
    # element and kills cross-batch leakage of the row shifts.
    pos = jax.lax.broadcasted_iota(jnp.int32, (m, 1), 0) % seq
    not_first = pos != 0
    not_last = pos != (seq - 1)

    # ---- conv1 (k=3, padding=1) as one im2col matmul on the MXU ----
    x_m1 = jnp.where(not_first, _shift_rows(x, +1), 0.0)   # x[b, i-1]
    x_p1 = jnp.where(not_last, _shift_rows(x, -1), 0.0)    # x[b, i+1]
    x_cat = jnp.concatenate([x_m1, x, x_p1], axis=1).astype(jnp.bfloat16)
    h1 = jnp.dot(x_cat, w1_ref[...], preferred_element_type=jnp.float32)
    h1 = jnp.maximum(h1 + b1_ref[...], 0.0)                 # (m, C1) f32

    # TODO(synk): nn.Dropout is identity in eval/inference mode; training-mode
    # stochastic dropout is intentionally not implemented here.

    # ---- conv2 (k=3, padding=1): 3 shifted K=C1 matmuls, h1 kept in vregs ----
    h1_m1 = jnp.where(not_first, _shift_rows(h1, +1), 0.0).astype(jnp.bfloat16)
    h1_p1 = jnp.where(not_last, _shift_rows(h1, -1), 0.0).astype(jnp.bfloat16)
    acc2 = jnp.dot(h1_m1, w2_ref[0], preferred_element_type=jnp.float32)
    acc2 += jnp.dot(h1.astype(jnp.bfloat16), w2_ref[1],
                    preferred_element_type=jnp.float32)
    acc2 += jnp.dot(h1_p1, w2_ref[2], preferred_element_type=jnp.float32)
    h2 = jnp.maximum(acc2 + b2_ref[...], 0.0)                # (m, C2) f32

    # ---- AdaptiveAvgPool1d(1) over the length axis, per batch element ----
    pooled = jnp.mean(h2.reshape(tb, seq, c2), axis=1)       # (TB, C2)

    # ---- fc on the whole batch tile (kept f32 for output precision) ----
    out_ref[...] = (jnp.dot(pooled, wf_ref[...],
                            preferred_element_type=jnp.float32)
                    + bf_ref[...])


def cnn_regression_forward(x_ncl, params, *, rows_per_step=256):
    """x_ncl: (B, Cin, L) float32 (PyTorch NCL layout). Returns (B, Dout)."""
    w1, b1, w2, b2, wf, bf = (params["w1"], params["b1"], params["w2"],
                              params["b2"], params["wf"], params["bf"])
    B, Cin, L = x_ncl.shape
    C1 = w1.shape[2]
    C2 = w2.shape[2]
    Dout = wf.shape[1]

    # Batch-tile size: aim for ~rows_per_step MXU rows (TB*L) per grid step.
    tb = max(1, rows_per_step // L)
    if tb >= B:
        tb = B
    else:
        tb = max(8, (tb // 8) * 8)  # keep output sublane dim 8-aligned
    grid = (pl.cdiv(B, tb),)
    b_pad = grid[0] * tb

    # NCL -> (B, L, Cin): channels on TPU lanes, length on sublanes. No
    # host-side length padding; the kernel masks the conv boundary itself.
    x_blc = jnp.transpose(x_ncl, (0, 2, 1)).astype(jnp.float32)
    if b_pad != B:
        x_blc = jnp.pad(x_blc, ((0, b_pad - B), (0, 0), (0, 0)))

    # Conv weights go in as bf16 (f32 accumulation happens in-kernel).
    w1_flat = w1.reshape(KERNEL_SIZE * Cin, C1).astype(jnp.bfloat16)
    w2_b = w2.astype(jnp.bfloat16)

    out = pl.pallas_call(
        _cnn_reg_kernel,
        out_shape=jax.ShapeDtypeStruct((b_pad, Dout), jnp.float32),
        grid_spec=pltpu.PrefetchScalarGridSpec(
            num_scalar_prefetch=0,
            grid=grid,
            in_specs=[
                pl.BlockSpec((tb, L, Cin), lambda i: (i, 0, 0)),
                # Constant index maps -> blocks are fetched once, not per step.
                pl.BlockSpec((KERNEL_SIZE * Cin, C1), lambda i: (0, 0)),
                pl.BlockSpec((1, C1), lambda i: (0, 0)),
                pl.BlockSpec((KERNEL_SIZE, C1, C2), lambda i: (0, 0, 0)),
                pl.BlockSpec((1, C2), lambda i: (0, 0)),
                pl.BlockSpec((C2, Dout), lambda i: (0, 0)),
                pl.BlockSpec((1, Dout), lambda i: (0, 0)),
            ],
            out_specs=pl.BlockSpec((tb, Dout), lambda i: (i, 0)),
        ),
        compiler_params=pltpu.CompilerParams(
            dimension_semantics=("parallel",)),
    )(x_blc, w1_flat, b1.astype(jnp.float32), w2_b, b2.astype(jnp.float32),
      wf.astype(jnp.float32), bf.astype(jnp.float32))
    return out[:B]


def _reference_forward(x_ncl, params):
    """Pure-JAX f32 reference matching the PyTorch forward pass."""
    w1, b1, w2, b2, wf, bf = (params["w1"], params["b1"], params["w2"],
                              params["b2"], params["wf"], params["bf"])
    L = x_ncl.shape[2]
    x = jnp.transpose(x_ncl, (0, 2, 1))                      # (B, L, Cin)
    xp = jnp.pad(x, ((0, 0), (1, 1), (0, 0)))
    h1 = sum(jnp.einsum("bli,io->blo", xp[:, k:k + L, :], w1[k])
             for k in range(KERNEL_SIZE)) + b1
    h1 = jnp.maximum(h1, 0.0)
    h1p = jnp.pad(h1, ((0, 0), (1, 1), (0, 0)))
    h2 = sum(jnp.einsum("bli,io->blo", h1p[:, k:k + L, :], w2[k])
             for k in range(KERNEL_SIZE)) + b2
    h2 = jnp.maximum(h2, 0.0)
    pooled = jnp.mean(h2, axis=1)                            # (B, C2)
    return pooled @ wf + bf


def init_params(key, input_channels, output_dim, conv_filters=64):
    """Deterministic synthetic parameters matching the module's shapes.

    Conv1d weights are stored kernel-major as (K, Cin, Cout) (torch stores
    (Cout, Cin, K)); the Linear weight is stored as (in, out) (torch: (out, in)).
    """
    c1 = conv_filters
    c2 = conv_filters * 2
    ks = jax.random.split(key, 6)
    s = 0.05
    return {
        "w1": s * jax.random.normal(ks[0], (KERNEL_SIZE, input_channels, c1),
                                    jnp.float32),
        "b1": s * jax.random.normal(ks[1], (1, c1), jnp.float32),
        "w2": s * jax.random.normal(ks[2], (KERNEL_SIZE, c1, c2), jnp.float32),
        "b2": s * jax.random.normal(ks[3], (1, c2), jnp.float32),
        "wf": s * jax.random.normal(ks[4], (c2, output_dim), jnp.float32),
        "bf": s * jax.random.normal(ks[5], (1, output_dim), jnp.float32),
    }


if __name__ == "__main__":
    B, Cin, L = 2, 4, 16
    conv_filters = 64
    output_dim = 8

    key = jax.random.PRNGKey(0)
    kx, kp = jax.random.split(key)
    x = jax.random.normal(kx, (B, Cin, L), jnp.float32)  # NCL, like PyTorch
    params = init_params(kp, Cin, output_dim, conv_filters)

    out = cnn_regression_forward(x, params)
    jax.block_until_ready(out)
    assert out.shape == (B, output_dim)

    # Loose tolerance: conv matmuls use bf16 operands with f32 accumulation.
    ref = _reference_forward(x, params)
    assert jnp.allclose(out, ref, rtol=5e-2, atol=5e-3)

    print("KERNEL_OK")
</pallas_src>

<mosaic_0001>
module attributes {stable_mosaic.version = 11 : i64} {
  func.func @_cnn_reg_kernel(%arg0: i32, %arg1: memref<2x16x4xf32, #tpu.memory_space<vmem>>, %arg2: memref<12x64xbf16, #tpu.memory_space<vmem>>, %arg3: memref<1x64xf32, #tpu.memory_space<vmem>>, %arg4: memref<3x64x128xbf16, #tpu.memory_space<vmem>>, %arg5: memref<1x128xf32, #tpu.memory_space<vmem>>, %arg6: memref<128x8xf32, #tpu.memory_space<vmem>>, %arg7: memref<1x8xf32, #tpu.memory_space<vmem>>, %arg8: memref<2x8xf32, #tpu.memory_space<vmem>>) attributes {dimension_semantics = [#tpu.dimension_semantics<parallel>], iteration_bounds = array<i64: 1>, scalar_prefetch = 0 : i64, scratch_operands = 0 : i64, tpu.core_type = #tpu.core_type<tc>, window_params = [{transform_indices = @transform_0, window_bounds = array<i64: 2, 16, 4>}, {pipeline_mode = #tpu.pipeline_mode<synchronous>, transform_indices = @transform_1, window_bounds = array<i64: 12, 64>}, {pipeline_mode = #tpu.pipeline_mode<synchronous>, transform_indices = @transform_2, window_bounds = array<i64: 1, 64>}, {pipeline_mode = #tpu.pipeline_mode<synchronous>, transform_indices = @transform_3, window_bounds = array<i64: 3, 64, 128>}, {pipeline_mode = #tpu.pipeline_mode<synchronous>, transform_indices = @transform_4, window_bounds = array<i64: 1, 128>}, {pipeline_mode = #tpu.pipeline_mode<synchronous>, transform_indices = @transform_5, window_bounds = array<i64: 128, 8>}, {pipeline_mode = #tpu.pipeline_mode<synchronous>, transform_indices = @transform_6, window_bounds = array<i64: 1, 8>}, {transform_indices = @transform_7, window_bounds = array<i64: 2, 8>}]} {
    %c0 = arith.constant 0 : index
    %c0_0 = arith.constant 0 : index
    %c0_1 = arith.constant 0 : index
    %0 = vector.load %arg1[%c0, %c0_0, %c0_1] : memref<2x16x4xf32, #tpu.memory_space<vmem>>, vector<2x16x4xf32>
    %1 = vector.shape_cast %0 : vector<2x16x4xf32> to vector<32x4xf32>
    %2 = tpu.iota {dimensions = array<i32: 0>} : vector<32x1xi32>
    %c16_i32 = arith.constant 16 : i32
    %c0_i32 = arith.constant 0 : i32
    %3 = arith.cmpi eq, %c16_i32, %c0_i32 : i32
    %c1_i32 = arith.constant 1 : i32
    %4 = arith.select %3, %c1_i32, %c16_i32 : i32
    %5 = vector.broadcast %4 : i32 to vector<32x1xi32>
    %6 = arith.remsi %2, %5 : vector<32x1xi32>
    %c0_i32_2 = arith.constant 0 : i32
    %7 = vector.broadcast %c0_i32_2 : i32 to vector<32x1xi32>
    %8 = arith.cmpi ne, %6, %7 : vector<32x1xi32>
    %c0_i32_3 = arith.constant 0 : i32
    %9 = vector.broadcast %c0_i32_3 : i32 to vector<32x1xi32>
    %10 = arith.cmpi slt, %6, %9 : vector<32x1xi32>
    %c0_i32_4 = arith.constant 0 : i32
    %11 = arith.cmpi slt, %4, %c0_i32_4 : i32
    %12 = vector.broadcast %11 : i1 to vector<32x1xi1>
    %13 = vector.broadcast %12 : vector<32x1xi1> to vector<32x1xi1>
    %14 = arith.xori %10, %13 : vector<32x1xi1>
    %15 = arith.andi %14, %8 : vector<32x1xi1>
    %16 = vector.broadcast %4 : i32 to vector<32x1xi32>
    %17 = arith.addi %6, %16 : vector<32x1xi32>
    %18 = arith.select %15, %17, %6 : vector<32x1xi1>, vector<32x1xi32>
    %c0_i32_5 = arith.constant 0 : i32
    %19 = vector.broadcast %c0_i32_5 : i32 to vector<32x1xi32>
    %20 = arith.cmpi ne, %18, %19 : vector<32x1xi32>
    %c15_i32 = arith.constant 15 : i32
    %21 = vector.broadcast %c15_i32 : i32 to vector<32x1xi32>
    %22 = arith.cmpi ne, %18, %21 : vector<32x1xi32>
    %cst = arith.constant 0.000000e+00 : f32
    %23 = vector.broadcast %cst : f32 to vector<1x4xf32>
    %24 = vector.extract_strided_slice %1 {offsets = [0, 0], sizes = [31, 4], strides = [1, 1]} : vector<32x4xf32> to vector<31x4xf32>
    %25 = tpu.concatenate %23, %24 in 0 : vector<1x4xf32>, vector<31x4xf32> -> vector<32x4xf32>
    %cst_6 = arith.constant 0.000000e+00 : f32
    %26 = vector.shape_cast %20 : vector<32x1xi1> to vector<32x1xi1>
    %27 = vector.broadcast %26 : vector<32x1xi1> to vector<32x4xi1>
    %28 = vector.broadcast %cst_6 : f32 to vector<32x4xf32>
    %29 = arith.select %27, %25, %28 : vector<32x4xi1>, vector<32x4xf32>
    %cst_7 = arith.constant 0.000000e+00 : f32
    %30 = vector.broadcast %cst_7 : f32 to vector<1x4xf32>
    %31 = vector.extract_strided_slice %1 {offsets = [1, 0], sizes = [31, 4], strides = [1, 1]} : vector<32x4xf32> to vector<31x4xf32>
    %32 = tpu.concatenate %31, %30 in 0 : vector<31x4xf32>, vector<1x4xf32> -> vector<32x4xf32>
    %cst_8 = arith.constant 0.000000e+00 : f32
    %33 = vector.shape_cast %22 : vector<32x1xi1> to vector<32x1xi1>
    %34 = vector.broadcast %33 : vector<32x1xi1> to vector<32x4xi1>
    %35 = vector.broadcast %cst_8 : f32 to vector<32x4xf32>
    %36 = arith.select %34, %32, %35 : vector<32x4xi1>, vector<32x4xf32>
    %37 = tpu.concatenate %29, %1, %36 in 1 : vector<32x4xf32>, vector<32x4xf32>, vector<32x4xf32> -> vector<32x12xf32>
    %38 = arith.truncf %37 : vector<32x12xf32> to vector<32x12xbf16>
    %c0_9 = arith.constant 0 : index
    %c0_10 = arith.constant 0 : index
    %39 = vector.load %arg2[%c0_9, %c0_10] : memref<12x64xbf16, #tpu.memory_space<vmem>>, vector<12x64xbf16>
    %cst_11 = arith.constant dense<0.000000e+00> : vector<32x64xf32>
    %40 = tpu.matmul %38, %39, %cst_11 {dimension_numbers = #tpu.dot_dimension_numbers<[1], [0], [0], [1], [0, 0, 1, 1], [], []>} : vector<32x12xbf16>, vector<12x64xbf16>, vector<32x64xf32> -> vector<32x64xf32>
    %c0_12 = arith.constant 0 : index
    %c0_13 = arith.constant 0 : index
    %41 = vector.load %arg3[%c0_12, %c0_13] : memref<1x64xf32, #tpu.memory_space<vmem>>, vector<1x64xf32>
    %42 = vector.broadcast %41 : vector<1x64xf32> to vector<32x64xf32>
    %43 = arith.addf %40, %42 : vector<32x64xf32>
    %cst_14 = arith.constant 0.000000e+00 : f32
    %44 = vector.broadcast %cst_14 : f32 to vector<32x64xf32>
    %45 = arith.maximumf %43, %44 : vector<32x64xf32>
    %cst_15 = arith.constant 0.000000e+00 : f32
    %46 = vector.broadcast %cst_15 : f32 to vector<1x64xf32>
    %47 = vector.extract_strided_slice %45 {offsets = [0, 0], sizes = [31, 64], strides = [1, 1]} : vector<32x64xf32> to vector<31x64xf32>
    %48 = tpu.concatenate %46, %47 in 0 : vector<1x64xf32>, vector<31x64xf32> -> vector<32x64xf32>
    %cst_16 = arith.constant 0.000000e+00 : f32
    %49 = vector.shape_cast %20 : vector<32x1xi1> to vector<32x1xi1>
    %50 = vector.broadcast %49 : vector<32x1xi1> to vector<32x64xi1>
    %51 = vector.broadcast %cst_16 : f32 to vector<32x64xf32>
    %52 = arith.select %50, %48, %51 : vector<32x64xi1>, vector<32x64xf32>
    %53 = arith.truncf %52 : vector<32x64xf32> to vector<32x64xbf16>
    %cst_17 = arith.constant 0.000000e+00 : f32
    %54 = vector.broadcast %cst_17 : f32 to vector<1x64xf32>
    %55 = vector.extract_strided_slice %45 {offsets = [1, 0], sizes = [31, 64], strides = [1, 1]} : vector<32x64xf32> to vector<31x64xf32>
    %56 = tpu.concatenate %55, %54 in 0 : vector<31x64xf32>, vector<1x64xf32> -> vector<32x64xf32>
    %cst_18 = arith.constant 0.000000e+00 : f32
    %57 = vector.shape_cast %22 : vector<32x1xi1> to vector<32x1xi1>
    %58 = vector.broadcast %57 : vector<32x1xi1> to vector<32x64xi1>
    %59 = vector.broadcast %cst_18 : f32 to vector<32x64xf32>
    %60 = arith.select %58, %56, %59 : vector<32x64xi1>, vector<32x64xf32>
    %61 = arith.truncf %60 : vector<32x64xf32> to vector<32x64xbf16>
    %c0_19 = arith.constant 0 : index
    %c0_20 = arith.constant 0 : index
    %c0_21 = arith.constant 0 : index
    %62 = vector.load %arg4[%c0_19, %c0_20, %c0_21] : memref<3x64x128xbf16, #tpu.memory_space<vmem>>, vector<1x64x128xbf16>
    %63 = vector.shape_cast %62 : vector<1x64x128xbf16> to vector<64x128xbf16>
    %cst_22 = arith.constant dense<0.000000e+00> : vector<32x128xf32>
    %64 = tpu.matmul %53, %63, %cst_22 {dimension_numbers = #tpu.dot_dimension_numbers<[1], [0], [0], [1], [0, 0, 1, 1], [], []>} : vector<32x64xbf16>, vector<64x128xbf16>, vector<32x128xf32> -> vector<32x128xf32>
    %65 = arith.truncf %45 : vector<32x64xf32> to vector<32x64xbf16>
    %c1 = arith.constant 1 : index
    %c0_23 = arith.constant 0 : index
    %c0_24 = arith.constant 0 : index
    %66 = vector.load %arg4[%c1, %c0_23, %c0_24] : memref<3x64x128xbf16, #tpu.memory_space<vmem>>, vector<1x64x128xbf16>
    %67 = vector.shape_cast %66 : vector<1x64x128xbf16> to vector<64x128xbf16>
    %cst_25 = arith.constant dense<0.000000e+00> : vector<32x128xf32>
    %68 = tpu.matmul %65, %67, %cst_25 {dimension_numbers = #tpu.dot_dimension_numbers<[1], [0], [0], [1], [0, 0, 1, 1], [], []>} : vector<32x64xbf16>, vector<64x128xbf16>, vector<32x128xf32> -> vector<32x128xf32>
    %69 = arith.addf %64, %68 : vector<32x128xf32>
    %c2 = arith.constant 2 : index
    %c0_26 = arith.constant 0 : index
    %c0_27 = arith.constant 0 : index
    %70 = vector.load %arg4[%c2, %c0_26, %c0_27] : memref<3x64x128xbf16, #tpu.memory_space<vmem>>, vector<1x64x128xbf16>
    %71 = vector.shape_cast %70 : vector<1x64x128xbf16> to vector<64x128xbf16>
    %cst_28 = arith.constant dense<0.000000e+00> : vector<32x128xf32>
    %72 = tpu.matmul %61, %71, %cst_28 {dimension_numbers = #tpu.dot_dimension_numbers<[1], [0], [0], [1], [0, 0, 1, 1], [], []>} : vector<32x64xbf16>, vector<64x128xbf16>, vector<32x128xf32> -> vector<32x128xf32>
    %73 = arith.addf %69, %72 : vector<32x128xf32>
    %c0_29 = arith.constant 0 : index
    %c0_30 = arith.constant 0 : index
    %74 = vector.load %arg5[%c0_29, %c0_30] : memref<1x128xf32, #tpu.memory_space<vmem>>, vector<1x128xf32>
    %75 = vector.broadcast %74 : vector<1x128xf32> to vector<32x128xf32>
    %76 = arith.addf %73, %75 : vector<32x128xf32>
    %cst_31 = arith.constant 0.000000e+00 : f32
    %77 = vector.broadcast %cst_31 : f32 to vector<32x128xf32>
    %78 = arith.maximumf %76, %77 : vector<32x128xf32>
    %79 = vector.shape_cast %78 : vector<32x128xf32> to vector<2x16x128xf32>
    %cst_32 = arith.constant dense<0.000000e+00> : vector<2x128xf32>
    %80 = vector.multi_reduction <add>, %79, %cst_32 [1] : vector<2x16x128xf32> to vector<2x128xf32>
    %cst_33 = arith.constant 1.600000e+01 : f32
    %81 = vector.broadcast %cst_33 : f32 to vector<2x128xf32>
    %82 = arith.divf %80, %81 : vector<2x128xf32>
    %c0_34 = arith.constant 0 : index
    %c0_35 = arith.constant 0 : index
    %83 = vector.load %arg6[%c0_34, %c0_35] : memref<128x8xf32, #tpu.memory_space<vmem>>, vector<128x8xf32>
    %cst_36 = arith.constant dense<0.000000e+00> : vector<2x8xf32>
    %84 = tpu.matmul %82, %83, %cst_36 {dimension_numbers = #tpu.dot_dimension_numbers<[1], [0], [0], [1], [0, 0, 1, 1], [], []>} : vector<2x128xf32>, vector<128x8xf32>, vector<2x8xf32> -> vector<2x8xf32>
    %c0_37 = arith.constant 0 : index
    %c0_38 = arith.constant 0 : index
    %85 = vector.load %arg7[%c0_37, %c0_38] : memref<1x8xf32, #tpu.memory_space<vmem>>, vector<1x8xf32>
    %86 = vector.broadcast %85 : vector<1x8xf32> to vector<2x8xf32>
    %87 = arith.addf %84, %86 : vector<2x8xf32>
    %c0_39 = arith.constant 0 : index
    %c0_40 = arith.constant 0 : index
    %88 = vector.load %arg8[%c0_39, %c0_40] : memref<2x8xf32, #tpu.memory_space<vmem>>, vector<2x8xf32>
    tpu.vector_store %arg8[%c0_39, %c0_40], %87 {strides = array<i32>} : memref<2x8xf32, #tpu.memory_space<vmem>>, vector<2x8xf32>,
    return
  }
  func.func @transform_0(%arg0: i32) -> (i32, i32, i32) {
    %c0_i32 = arith.constant 0 : i32
    %c0_i32_0 = arith.constant 0 : i32
    %c0_i32_1 = arith.constant 0 : i32
    return %arg0, %c0_i32, %c0_i32_0 : i32, i32, i32
  }
  func.func @transform_1(%arg0: i32) -> (i32, i32) {
    %c0_i32 = arith.constant 0 : i32
    %c0_i32_0 = arith.constant 0 : i32
    %c0_i32_1 = arith.constant 0 : i32
    return %c0_i32, %c0_i32_0 : i32, i32
  }
  func.func @transform_2(%arg0: i32) -> (i32, i32) {
    %c0_i32 = arith.constant 0 : i32
    %c0_i32_0 = arith.constant 0 : i32
    %c0_i32_1 = arith.constant 0 : i32
    return %c0_i32, %c0_i32_0 : i32, i32
  }
  func.func @transform_3(%arg0: i32) -> (i32, i32, i32) {
    %c0_i32 = arith.constant 0 : i32
    %c0_i32_0 = arith.constant 0 : i32
    %c0_i32_1 = arith.constant 0 : i32
    %c0_i32_2 = arith.constant 0 : i32
    return %c0_i32, %c0_i32_0, %c0_i32_1 : i32, i32, i32
  }
  func.func @transform_4(%arg0: i32) -> (i32, i32) {
    %c0_i32 = arith.constant 0 : i32
    %c0_i32_0 = arith.constant 0 : i32
    %c0_i32_1 = arith.constant 0 : i32
    return %c0_i32, %c0_i32_0 : i32, i32
  }
  func.func @transform_5(%arg0: i32) -> (i32, i32) {
    %c0_i32 = arith.constant 0 : i32
    %c0_i32_0 = arith.constant 0 : i32
    %c0_i32_1 = arith.constant 0 : i32
    return %c0_i32, %c0_i32_0 : i32, i32
  }
  func.func @transform_6(%arg0: i32) -> (i32, i32) {
    %c0_i32 = arith.constant 0 : i32
    %c0_i32_0 = arith.constant 0 : i32
    %c0_i32_1 = arith.constant 0 : i32
    return %c0_i32, %c0_i32_0 : i32, i32
  }
  func.func @transform_7(%arg0: i32) -> (i32, i32) {
    %c0_i32 = arith.constant 0 : i32
    %c0_i32_0 = arith.constant 0 : i32
    return %arg0, %c0_i32 : i32, i32
  }
}

</mosaic_0001>

<bundles_post_ra>
// kernel: tpu_custom_call.1
= control target key start
LH: loop header
LB: loop body
LE: loop exit
PB: predicated region body
PF: predicated region fallthrough
CT: control target
= control target key end

     0   :  { %v32_v3 = vlaneseq  ;;  %s694_s9 = smov 4   ;;  %vm122_vm0 = vcmask 1046528   ;;  %s906_s0 = inlined_call_operand.vmem [shape: f32[2,16,4], index: 0, kind: input, shape index: {}]   ;;  %s907_s1 = inlined_call_operand.vmem [shape: bf16[12,64], index: 1, kind: input, shape index: {}]   ;;  %s908_s2 = inlined_call_operand.vmem [shape: f32[1,64], index: 2, kind: input, shape index: {}]   ;;  %s909_s3 = inlined_call_operand.vmem [shape: bf16[3,64,128], index: 3, kind: input, shape index: {}]   ;;  %s910_s4 = inlined_call_operand.vmem [shape: f32[1,128], index: 4, kind: input, shape index: {}]   ;;  %s911_s5 = inlined_call_operand.vmem [shape: f32[128,8], index: 5, kind: input, shape index: {}]   ;;  %s912_s6 = inlined_call_operand.vmem [shape: f32[1,8], index: 6, kind: input, shape index: {}]   ;;  %s913_s7 = inlined_call_operand.hbm [shape: f32[2,8], index: 7, kind: output, shape index: {}]  }
   0x1   :  { %v28_v0 = vld [vmem:[%s906_s0] sm:$0xff]  ;;  %v29_v1 = vld [vmem:[%s906_s0 + $0x8] sm:$0xff]  ;;  %v30_v2 = vld [vmem:[%s906_s0 + $0x10] sm:$0xff] }
   0x2   :  { %v643_v4 = vpack.i.bf16 %v29_v1, %v28_v0  ;;  %v31_v5 = vld [vmem:[%s906_s0 + $0x18] sm:$0xff]  ;;  %v124_v6 = vrot.slane %v29_v1, 1  ;;  %v33_v7 = vshrl.u32 %v32_v3, 7  ;;  %v126_v8 = vrot.slane %v30_v2, 1 }
   0x3   :  { %v123_v9 = vrot.slane %v28_v0, 1  ;;  %v128_v10 = vrot.slane %v31_v5, 1  ;;  %v653_v11 = vpack.i.bf16 %v31_v5, %v30_v2 }
   0x4   :  { %644 = vrot.lane.b32.xlu0 %v643_v4, %s694_s9  ;;  %v34_v12 = vadd.s32 8, %v33_v7  ;;  %v36_v13 = vadd.s32 24, %v33_v7 }
   0x5   :  { %12 = vsyncpa [#allocation3], 0  ;;  %654 = vrot.lane.b32.xlu1 %v653_v11, %s694_s9  ;;  %v127_v15 = vsel %vm122_vm0, %v124_v6, %v126_v8  ;;  %v134_v17 = vsel %vm122_vm0, %v128_v10, 0.0  ;;  %v125_v18 = vsel %vm122_vm0, %v123_v9, %v124_v6  ;;  %v129_v19 = vsel %vm122_vm0, %v126_v8, %v128_v10  ;;  %s695_s0 = smov 8   ;;  %v552_v29 = vld [vmem:[%s907_s1] sm:$0xf] }
   0x6   :  { %v48_v14 = vand.u32 15, %v34_v12  ;;  %v62_v16 = vand.u32 15, %v36_v13  ;;  %v99_v26 = vrot.slane %v29_v1, 7  ;;  %v98_v27 = vrot.slane %v28_v0, 7  ;;  %v626_v30 = vld [vmem:[%s907_s1] sm:$0x30] }
   0x7   :  { %vm97_vm3 = vcmask 1040384   ;;  %v553_v31 = vor.u32 %v626_v30, %v552_v29  ;;  %vm205_vm4 = vcmask 1045504   ;;  %v35_v33 = vadd.s32 16, %v33_v7  ;;  %v634_v3 = vld [vmem:[%s909_s3 + $0x38] sm:$0xff]  ;;  %v629_v6 = vld [vmem:[%s909_s3 + $0x10] sm:$0xff]  ;;  %v628_v8 = vld [vmem:[%s909_s3 + $0x8] sm:$0xff] }
   0x8   :  { %vm754_vm1 = vcmp.ne.s32.totalorder %v48_v14, 15  ;;  %vm758_vm2 = vcmp.ne.s32.totalorder %v62_v16, 15  ;;  %v100_v28 = vsel %vm97_vm3, %v98_v27, %v99_v26  ;;  %v101_v36 = vrot.slane %v30_v2, 7  ;;  %326 = vmatpush.bf16.msra.mxu1 %v634_v3  ;;  %v630_v4 = vld [vmem:[%s909_s3 + $0x18] sm:$0xff]  ;;  %v631_v9 = vld [vmem:[%s909_s3 + $0x20] sm:$0xff]  ;;  %v637_v12 = vld [vmem:[%s909_s3 + $0x50] sm:$0xff] }
   0x9   :  { %v144_v22 = vsel %vm754_vm1, %v127_v15, 0.0  ;;  %v146_v23 = vsel %vm758_vm2, %v134_v17, 0.0  ;;  %v207_v32 = vsel %vm205_vm4, %v553_v31, 0  ;;  %v55_v35 = vand.u32 15, %v35_v33  ;;  %375 = vmatpush.bf16.msra.mxu2 %v630_v4  ;;  %v638_v10 = vld [vmem:[%s909_s3 + $0x58] sm:$0xff]  ;;  %v627_v11 = vld [vmem:[%s909_s3] sm:$0xff] }
   0xa   :  { %v648_v24 = vpack.i.bf16 %v144_v22, %v125_v18  ;;  %v658_v25 = vpack.i.bf16 %v146_v23, %v129_v19  ;;  %216 = vmatpush.bf16.msra.mxu0 %v207_v32  ;;  %v41_v37 = vand.u32 15, %v33_v7  ;;  %v103_v39 = vrot.slane %v31_v5, 7  ;;  %v633_v5 = vld [vmem:[%s909_s3 + $0x30] sm:$0xff]  ;;  %v632_v7 = vld [vmem:[%s909_s3 + $0x28] sm:$0xff]  ;;  %433 = vmatpush.bf16.msra.mxu3 %v638_v10  ;;  %v635_v14 = vld [vmem:[%s909_s3 + $0x40] sm:$0xff]  ;;  %s697_s19 = smov [#allocation2]  }
   0xb   :  { %vm773_vm5 = vcmp.ne.s32.totalorder %v55_v35, 0  ;;  %v102_v41 = vsel %vm97_vm3, %v99_v26, %v101_v36  ;;  %v109_v42 = vsel %vm97_vm3, 0.0, %v98_v27  ;;  %vm175_vm7 = vcmask 31744   ;;  %v636_v13 = vld [vmem:[%s909_s3 + $0x48] sm:$0xff]  ;;  %v663_v15 = vld [vmem:[%s908_s2] ss:$0 sm:$0xff] }
   0xc   :  { %649 = vrot.lane.b32.xlu0 %v648_v24, %s695_s0  ;;  %vm779_vm6 = vcmp.ne.s32.totalorder %v41_v37, 0  ;;  %v104_v48 = vsel %vm97_vm3, %v101_v36, %v103_v39  ;;  %v120_v49 = vsel %vm773_vm5, %v102_v41, 0.0  ;;  %vm180_vm8 = vcmask 64512   ;;  %327 = vmatpush.bf16.msra.mxu1 %v633_v5  ;;  %v501_v40 = vld [vmem:[%s911_s5 + $0x70] sm:$0xff]  ;;  %v499_v21 = vld [vmem:[%s911_s5 + $0x60] sm:$0xff]  ;;  %v492_v5 = vld [vmem:[%s911_s5 + $0x28] sm:$0xff] }
   0xd   :  { %659 = vrot.lane.b32.xlu1 %v658_v25, %s695_s0  ;;  %v118_v50 = vsel %vm779_vm6, %v109_v42, 0.0  ;;  %vm198_vm9 = vcmask 97280   ;;  %376 = vmatpush.bf16.msra.mxu2 %v629_v6  ;;  %vm315_vm10 = vcmask 523264   ;;  %v493_v4 = vld [vmem:[%s911_s5 + $0x30] sm:$0xff]  ;;  %v664_v10 = vld [vmem:[%s910_s4] ss:$0 sm:$0xff] }
   0xe   :  { %434 = vmatpush.bf16.msra.mxu3 %v637_v12  ;;  %vm509_vm12 = vcmask 1041409   ;;  %s539_s20 = sshll.u32 %s697_s19, 4  ;;  %s541_s23 = sshll.u32 %s913_s7, 4  ;;  %vm532_vm13 = vcmask 58368   ;;  %s540_s20 = int_to_ptr.vmem [resolvable:$true] %s539_s20  ;;  %s542_s23 = int_to_ptr.hbm [resolvable:$true] %s541_s23 }
  0x10   :  { %328 = vmatpush.bf16.msra.mxu1 %v632_v7  ;;  %v491_v7 = vld [vmem:[%s911_s5 + $0x20] sm:$0xff] }
  0x11   :  { %377 = vmatpush.bf16.msra.mxu2 %v628_v8 }
  0x12   :  { %435 = vmatpush.bf16.msra.mxu3 %v636_v13  ;;  %v489_v13 = vld [vmem:[%s911_s5 + $0x10] sm:$0xff] }
  0x14   :  { %329 = vmatpush.bf16.msra.mxu1 %v631_v9 }
  0x15   :  { %378 = vmatpush.bf16.msra.mxu2 %v627_v11  ;;  %v490_v11 = vld [vmem:[%s911_s5 + $0x18] sm:$0xff] }
  0x16   :  { %436 = vmatpush.bf16.msra.mxu3 %v635_v14 }
  0x76   :  { %v645_v34 = vpop.permute.xlu0 %644 }
  0x77   :  { %v655_v38 = vpop.permute.xlu1 %654  ;;  %v647_v46 = vunpack.i.h.bf16 %v645_v34  ;;  %v646_v47 = vunpack.i.l.bf16 %v645_v34 }
  0x78   :  { %v657_v44 = vunpack.i.h.bf16 %v655_v38  ;;  %v656_v45 = vunpack.i.l.bf16 %v655_v38 }
  0x79   :  { %v176_v57 = vsel %vm175_vm7, %v118_v50, %v646_v47  ;;  %v177_v58 = vsel %vm175_vm7, %v100_v28, %v647_v46 }
  0x7a   :  { %v178_v54 = vsel %vm175_vm7, %v120_v49, %v656_v45  ;;  %v179_v55 = vsel %vm175_vm7, %v104_v48, %v657_v44 }
  0x7e   :  { %v650_v51 = vpop.permute.xlu0 %649 }
  0x7f   :  { %v652_v52 = vunpack.i.h.bf16 %v650_v51  ;;  %v651_v53 = vunpack.i.l.bf16 %v650_v51  ;;  %v660_v56 = vpop.permute.xlu1 %659 }
  0x80   :  { %v662_v59 = vunpack.i.h.bf16 %v660_v56  ;;  %v661_v60 = vunpack.i.l.bf16 %v660_v56  ;;  %v502_v56 = vld [vmem:[%s911_s5 + $0x78] sm:$0xff] }
  0x81   :  { %v181_v61 = vsel %vm180_vm8, %v176_v57, %v651_v53  ;;  %v182_v62 = vsel %vm180_vm8, %v177_v58, %v652_v52  ;;  %512 = vmatpush.msrb.mxu0 %v502_v56  ;;  %v500_v57 = vld [vmem:[%s911_s5 + $0x68] sm:$0xff] }
  0x82   :  { %v185_v63 = vpack.c.bf16 %v182_v62, %v181_v61  ;;  %v183_v0 = vsel %vm180_vm8, %v178_v54, %v661_v60  ;;  %v184_v1 = vsel %vm180_vm8, %v179_v55, %v662_v59  ;;  %v498_v60 = vld [vmem:[%s911_s5 + $0x58] sm:$0xff]  ;;  %v497_v61 = vld [vmem:[%s911_s5 + $0x50] sm:$0xff]  ;;  %v496_v62 = vld [vmem:[%s911_s5 + $0x48] sm:$0xff] }
  0x83   :  { %v186_v2 = vpack.c.bf16 %v184_v1, %v183_v0  ;;  %513 = vmatpush.msrb.mxu0 %v501_v40 }
  0x84   :  { %554 = vmatmul.msk.bf16.vlgmr.msra.gmra.mxu0 %vm198_vm9, %v185_v63  ;;  %v495_v63 = vld [vmem:[%s911_s5 + $0x40] sm:$0xff] }
  0x85   :  { %514 = vmatpush.msrb.mxu0 %v500_v57 }
  0x87   :  { %515 = vmatpush.msrb.mxu0 %v499_v21 }
  0x89   :  { %516 = vmatpush.msrb.mxu0 %v498_v60 }
  0x8b   :  { %517 = vmatpush.msrb.mxu0 %v497_v61 }
  0x8d   :  { %518 = vmatpush.msrb.mxu0 %v496_v62 }
  0x8f   :  { %519 = vmatpush.msrb.mxu0 %v495_v63 }
  0x94   :  { %555 = vmatmul.msk.bf16.gmra.mxu0 %vm198_vm9, %v186_v2  ;;  %v494_v2 = vld [vmem:[%s911_s5 + $0x38] sm:$0xff] }
  0x95   :  { %520 = vmatpush.msrb.mxu0 %v494_v2 }
  0x97   :  { %521 = vmatpush.msrb.mxu0 %v493_v4 }
  0x99   :  { %522 = vmatpush.msrb.mxu0 %v492_v5 }
  0x9b   :  { %523 = vmatpush.msrb.mxu0 %v491_v7 }
  0x9d   :  { %524 = vmatpush.msrb.mxu0 %v490_v11 }
  0x9f   :  { %525 = vmatpush.msrb.mxu0 %v489_v13 }
 0x101   :  { %v218_v16 = vpop.f32.mrf.mxu0 }
 0x102   :  { %v219_v17 = vadd.f32 %v663_v15, %v218_v16  ;;  %v488_v16 = vld [vmem:[%s911_s5 + $0x8] sm:$0xff] }
 0x103   :  { %526 = vmatpush.msrb.mxu0 %v488_v16 }
 0x104   :  { %v228_v18 = vmax.f32 %v219_v17, 0.0 }
 0x106   :  { %v236_v19 = vrot.slane %v228_v18, 7  ;;  %v254_v36 = vrot.slane %v228_v18, 1 }
 0x108   :  { %v247_v25 = vsel %vm97_vm3, 0.0, %v236_v19 }
 0x109   :  { %v220_v22 = vpop.f32.mrf.mxu0  ;;  %v248_v29 = vsel %vm779_vm6, %v247_v25, 0.0 }
 0x10a   :  { %v221_v23 = vadd.f32 %v663_v15, %v220_v22  ;;  %v487_v22 = vld [vmem:[%s911_s5] sm:$0xff] }
 0x10b   :  { %527 = vmatpush.msrb.mxu0 %v487_v22 }
 0x10c   :  { %v229_v24 = vmax.f32 %v221_v23, 0.0 }
 0x10e   :  { %v237_v26 = vrot.slane %v229_v24, 7  ;;  %v280_v27 = vpack.c.bf16 %v229_v24, %v228_v18  ;;  %v255_v34 = vrot.slane %v229_v24, 1 }
 0x110   :  { %580 = vmatmul.msk.bf16.vlgmr.msra.gmra.mxu1 %vm315_vm10, %v280_v27  ;;  %v238_v28 = vsel %vm97_vm3, %v236_v19, %v237_v26  ;;  %v256_v41 = vsel %vm122_vm0, %v254_v36, %v255_v34  ;;  %v696_v27 = vmov 16.0  }
 0x111   :  { %v223_v30 = vpop.f32.mrf.mxu0  ;;  %v252_v31 = vpack.c.bf16 %v238_v28, %v248_v29  ;;  %666 = vrcp.f32 %v696_v27 }
 0x112   :  { %v224_v32 = vadd.f32 %v663_v15, %v223_v30 }
 0x113   :  { %598 = vmatmul.msk.bf16.vlgmr.msra.gmra.mxu2 %vm315_vm10, %v252_v31 }
 0x114   :  { %v230_v33 = vmax.f32 %v224_v32, 0.0 }
 0x116   :  { %v257_v35 = vrot.slane %v230_v33, 1  ;;  %v239_v38 = vrot.slane %v230_v33, 7 }
 0x118   :  { %v258_v37 = vsel %vm122_vm0, %v255_v34, %v257_v35  ;;  %v240_v46 = vsel %vm97_vm3, %v237_v26, %v239_v38 }
 0x119   :  { %v225_v39 = vpop.f32.mrf.mxu0  ;;  %v267_v42 = vsel %vm754_vm1, %v258_v37, 0.0  ;;  %v250_v51 = vsel %vm773_vm5, %v240_v46, 0.0 }
 0x11a   :  { %v226_v43 = vadd.f32 %v663_v15, %v225_v39  ;;  %v270_v44 = vpack.c.bf16 %v267_v42, %v256_v41 }
 0x11c   :  { %v231_v45 = vmax.f32 %v226_v43, 0.0  ;;  %624 = vmatmul.msk.bf16.vlgmr.msra.gmra.mxu3 %vm315_vm10, %v270_v44 }
 0x11e   :  { %v241_v47 = vrot.slane %v231_v45, 7  ;;  %v281_v48 = vpack.c.bf16 %v231_v45, %v230_v33  ;;  %v259_v49 = vrot.slane %v231_v45, 1  ;;  %v667_v33 = vpop.eup %666 }
 0x11f   :  { %v479_v39 = vmul.f32 16.0, %v667_v33  ;;  %vm483_vm11 = vweird.f32 %v667_v33 }
 0x120   :  { %581 = vmatmul.msk.bf16.gmra.mxu1 %vm315_vm10, %v281_v48  ;;  %v242_v50 = vsel %vm97_vm3, %v239_v38, %v241_v47  ;;  %v265_v20 = vsel %vm122_vm0, %v259_v49, 0.0  ;;  %v260_v53 = vsel %vm122_vm0, %v257_v35, %v259_v49 }
 0x121   :  { %v253_v52 = vpack.c.bf16 %v242_v50, %v250_v51  ;;  %v269_v54 = vsel %vm758_vm2, %v265_v20, 0.0  ;;  %v480_v45 = vsub.f32 1.0, %v479_v39 }
 0x122   :  { %v271_v55 = vpack.c.bf16 %v269_v54, %v260_v53 }
 0x123   :  { %599 = vmatmul.msk.bf16.gmra.mxu2 %vm315_vm10, %v253_v52  ;;  %v481_v49 = vmul.f32 %v667_v33, %v480_v45 }
 0x125   :  { %v482_v20 = vadd.f32 %v667_v33, %v481_v49 }
 0x127   :  { %v484_v56 = vsel %vm483_vm11, %v667_v33, %v482_v20 }
 0x12c   :  { %625 = vmatmul.msk.bf16.gmra.mxu3 %vm315_vm10, %v271_v55 }
 0x18d   :  { %v331_v59 = vpop.f32.mrf.mxu1 }
 0x195   :  { %v333_v3 = vpop.f32.mrf.mxu1 }
 0x196   :  { %v380_v58 = vpop.f32.mrf.mxu2 }
 0x197   :  { %v381_v6 = vadd.f32 %v380_v58, %v331_v59  ;;  %v665_v59 = vld [vmem:[%s912_s6] ss:$0 sm:$0xff] }
 0x19d   :  { %v336_v19 = vpop.f32.mrf.mxu1 }
 0x19e   :  { %v382_v0 = vpop.f32.mrf.mxu2 }
 0x19f   :  { %v438_v1 = vpop.f32.mrf.mxu3  ;;  %v383_v8 = vadd.f32 %v382_v0, %v333_v3 }
 0x1a0   :  { %v448_v9 = vadd.f32 %v438_v1, %v381_v6 }
 0x1a2   :  { %v456_v17 = vadd.f32 %v664_v10, %v448_v9 }
 0x1a4   :  { %v460_v24 = vmax.f32 %v456_v17, 0.0 }
 0x1a5   :  { %v338_v32 = vpop.f32.mrf.mxu1 }
 0x1a6   :  { %v385_v15 = vpop.f32.mrf.mxu2 }
 0x1a7   :  { %v440_v12 = vpop.f32.mrf.mxu3  ;;  %v386_v28 = vadd.f32 %v385_v15, %v336_v19 }
 0x1a8   :  { %v449_v14 = vadd.f32 %v440_v12, %v383_v8 }
 0x1aa   :  { %v457_v18 = vadd.f32 %v664_v10, %v449_v14 }
 0x1ac   :  { %v461_v23 = vmax.f32 %v457_v18, 0.0 }
 0x1ae   :  { %v464_v26 = vadd.f32 %v461_v23, %v460_v24  ;;  %v387_v29 = vpop.f32.mrf.mxu2 }
 0x1af   :  { %v443_v25 = vpop.f32.mrf.mxu3  ;;  %v388_v34 = vadd.f32 %v387_v29, %v338_v32 }
 0x1b0   :  { %v465_v30 = vrot.slane %v464_v26, 4  ;;  %v450_v31 = vadd.f32 %v443_v25, %v386_v28 }
 0x1b2   :  { %v466_v36 = vadd.f32 %v465_v30, %v464_v26  ;;  %v458_v37 = vadd.f32 %v664_v10, %v450_v31 }
 0x1b4   :  { %v467_v42 = vrot.slane %v466_v36, 2  ;;  %v462_v43 = vmax.f32 %v458_v37, 0.0 }
 0x1b6   :  { %v468_v47 = vadd.f32 %v467_v42, %v466_v36 }
 0x1b7   :  { %v445_v35 = vpop.f32.mrf.mxu3 }
 0x1b8   :  { %v451_v38 = vadd.f32 %v445_v35, %v388_v34  ;;  %v469_v52 = vrot.slane %v468_v47, 1 }
 0x1ba   :  { %v459_v41 = vadd.f32 %v664_v10, %v451_v38  ;;  %v470_v54 = vadd.f32 %v469_v52, %v468_v47 }
 0x1bc   :  { %v463_v44 = vmax.f32 %v459_v41, 0.0  ;;  %v485_v57 = vmul.f32 %v484_v56, %v470_v54 }
 0x1be   :  { %v471_v46 = vadd.f32 %v463_v44, %v462_v43 }
 0x1c0   :  { %v472_v48 = vrot.slane %v471_v46, 4 }
 0x1c2   :  { %v473_v50 = vadd.f32 %v472_v48, %v471_v46 }
 0x1c4   :  { %v474_v51 = vrot.slane %v473_v50, 2 }
 0x1c6   :  { %v475_v53 = vadd.f32 %v474_v51, %v473_v50 }
 0x1c8   :  { %v476_v55 = vrot.slane %v475_v53, 1 }
 0x1ca   :  { %v477_v40 = vadd.f32 %v476_v55, %v475_v53 }
 0x1cc   :  { %v486_v21 = vmul.f32 %v484_v56, %v477_v40 }
 0x1ce   :  { %v510_v58 = vsel %vm509_vm12, %v486_v21, %v485_v57 }
 0x1cf   :  { %528 = vmatmul.f32.vlgmr.msrb.gmra.mxu0 %v510_v58 }
 0x24c   :  { %v529_v60 = vpop.f32.mrf.mxu0 }
 0x24d   :  { %v530_v61 = vadd.f32 %v665_v59, %v529_v60 }
 0x24f   :  { %533 = vst.msk [vmem:[#allocation2] sm:$0x3] %vm532_vm13, %v530_v61 }
 0x250   :  { %544 = dma.vmem_to_hbm [thread:$0]  %s540_s20, 32, %s542_s23, [#allocation3]  }
 0x251   :  { %692 = dma.done.wait [#allocation3], 32  }
 0x252   :  { %693 = vsyncadd [#allocation3], 4294967264 }
 0x253   :  { %549 = vsyncpa [#allocation3], 1 }

</bundles_post_ra>
